<compile_context>
chip_gen: v7x
topology: tpu7x:2x2x1
jax: 0.10.0
libtpu: 0.0.40
codegen_flags: <defaults>
</compile_context>

<pallas_src>
import math

import jax
import jax.numpy as jnp
import numpy as np
from jax import lax
from jax.experimental import pallas as pl
from jax.experimental.pallas import tpu as pltpu


def _round_up(a, b):
    return ((a + b - 1) // b) * b


# ----------------------------- kernels ------------------------------------
# All operands arrive pre-cast to the MXU dtype (bf16); accumulation is f32.
# If no scratch ref is passed, the output block itself (f32, block index
# constant over k) is used as the accumulator.


def _mix_kernel(x_ref, w_ref, t_ref, ns_ref, b_ref, o_ref, *scratch):
    """target given: W_mix = T + (n/(1-p)) * (W - T), fused with the matmul."""
    acc_ref = scratch[0] if scratch else o_ref
    k = pl.program_id(2)

    @pl.when(k == 0)
    def _():
        acc_ref[...] = jnp.zeros_like(acc_ref)

    w = w_ref[...]                      # (tn, tk) bf16
    t = t_ref[...]                      # (tn, tk) bf16
    mixed = t + ns_ref[...] * (w - t)   # ns: (1, tk) = noise/(1-p), bf16, bcast over tn
    acc_ref[...] += lax.dot_general(
        x_ref[...], mixed, (((1,), (1,)), ((), ())),
        preferred_element_type=jnp.float32)

    @pl.when(k == pl.num_programs(2) - 1)
    def _():
        o_ref[...] = (acc_ref[...] + b_ref[...]).astype(o_ref.dtype)


def _drop_kernel(x_ref, w_ref, ns_ref, b_ref, o_ref, *scratch):
    """target=None: fold the per-column mask into the activations, plain W stream."""
    acc_ref = scratch[0] if scratch else o_ref
    k = pl.program_id(2)

    @pl.when(k == 0)
    def _():
        acc_ref[...] = jnp.zeros_like(acc_ref)

    xs = x_ref[...] * ns_ref[...]       # (tm, tk) * (1, tk), bf16
    acc_ref[...] += lax.dot_general(
        xs, w_ref[...], (((1,), (1,)), ((), ())),
        preferred_element_type=jnp.float32)

    @pl.when(k == pl.num_programs(2) - 1)
    def _():
        o_ref[...] = (acc_ref[...] + b_ref[...]).astype(o_ref.dtype)


def _plain_kernel(x_ref, w_ref, b_ref, o_ref, *scratch):
    """eval / p==0 / p==1 / pre-mixed weights: ordinary fused linear."""
    acc_ref = scratch[0] if scratch else o_ref
    k = pl.program_id(2)

    @pl.when(k == 0)
    def _():
        acc_ref[...] = jnp.zeros_like(acc_ref)

    acc_ref[...] += lax.dot_general(
        x_ref[...], w_ref[...], (((1,), (1,)), ((), ())),
        preferred_element_type=jnp.float32)

    @pl.when(k == pl.num_programs(2) - 1)
    def _():
        o_ref[...] = (acc_ref[...] + b_ref[...]).astype(o_ref.dtype)


# ----------------------------- wrapper -------------------------------------


def mix_linear(x, weight, bias, target, noise, p, training,
               *, tm=None, tn=None, tk=None, mxu_dtype=jnp.bfloat16):
    """Forward of MixLinear.

    x: (M, K); weight: (N, K); bias: (N,) or None; target: (N, K) or None;
    noise: (K,) Bernoulli(1-p) mask over input features (columns of weight).
    Output is (M, N) in x.dtype. Note: MXU operands are fed in bf16 (f32
    accumulation), so results differ from an f32-exact Linear by ~1e-2 rel.
    """
    M, K = x.shape
    N, Kw = weight.shape
    assert Kw == K, "weight must be (out_features, in_features)"

    p = float(p)
    if p < 0.0 or p > 1.0:
        raise ValueError(f"mix probability must be in [0, 1], got {p}")

    out_dtype = x.dtype

    # ---- mode selection -----------------------------------------------------
    if (not training) or p == 0.0:
        mode, w_eff = "plain", weight
    elif p == 1.0:
        if target is None:
            # W_mix == 0 -> y is just the (broadcast) bias; skip the kernel and
            # avoid materializing an N*K zeros array in HBM.
            if bias is None:
                return jnp.zeros((M, N), out_dtype)
            return jnp.broadcast_to(bias.astype(out_dtype)[None, :], (M, N))
        mode, w_eff = "plain", target
    elif target is None:
        mode, w_eff = "drop", weight
    else:
        mode, w_eff = "mix", weight

    # ---- tiles: MXU-filling, (8,128)-aligned, clamped to problem size --------
    tm = tm or min(_round_up(M, 8), 512)
    tn = tn or min(_round_up(N, 128), 512)
    tk = tk or min(_round_up(K, 128), 512)

    Mp, Np, Kp = _round_up(M, tm), _round_up(N, tn), _round_up(K, tk)

    # For many i-tiles, pre-materialize W_mix once (one elementwise pass) and
    # reuse it across all i-tiles via the plain kernel: avoids re-streaming the
    # target and re-doing the 3-op mix per i-tile.
    if mode == "mix" and (Mp // tm) > 2:
        ns_row = (noise.astype(jnp.float32) / (1.0 - p))[None, :]
        w_eff = (target.astype(jnp.float32)
                 + ns_row * (weight.astype(jnp.float32) - target.astype(jnp.float32)))
        mode = "plain"

    def pad2(a, r, c, dt):
        a = a.astype(dt)
        if a.shape == (r, c):
            return a
        return jnp.pad(a, ((0, r - a.shape[0]), (0, c - a.shape[1])))

    # Stream x / W / T / noise in the MXU dtype (bf16); bias stays f32 (tiny).
    xf = pad2(x, Mp, Kp, mxu_dtype)
    wf = pad2(w_eff, Np, Kp, mxu_dtype)
    bf = (jnp.zeros((1, Np), jnp.float32) if bias is None
          else pad2(bias.reshape(1, N), 1, Np, jnp.float32))

    grid = (Mp // tm, Np // tn, Kp // tk)

    x_spec = pl.BlockSpec((tm, tk), lambda i, j, k: (i, k))
    w_spec = pl.BlockSpec((tn, tk), lambda i, j, k: (j, k))   # natural (N,K) layout
    ns_spec = pl.BlockSpec((1, tk), lambda i, j, k: (0, k))   # lane-dense noise row
    b_spec = pl.BlockSpec((1, tn), lambda i, j, k: (0, j))
    o_spec = pl.BlockSpec((tm, tn), lambda i, j, k: (i, j))

    if mode == "mix":
        tf = pad2(target, Np, Kp, mxu_dtype)
        nsf = pad2((noise.astype(jnp.float32) / (1.0 - p)).reshape(1, K),
                   1, Kp, mxu_dtype)
        kernel = _mix_kernel
        inputs = (xf, wf, tf, nsf, bf)
        in_specs = [x_spec, w_spec, w_spec, ns_spec, b_spec]
        n_wstreams, has_ns = 2, True
    elif mode == "drop":
        nsf = pad2((noise.astype(jnp.float32) / (1.0 - p)).reshape(1, K),
                   1, Kp, mxu_dtype)
        kernel = _drop_kernel
        inputs = (xf, wf, nsf, bf)
        in_specs = [x_spec, w_spec, ns_spec, b_spec]
        n_wstreams, has_ns = 1, True
    else:
        kernel = _plain_kernel
        inputs = (xf, wf, bf)
        in_specs = [x_spec, w_spec, b_spec]
        n_wstreams, has_ns = 1, False

    # f32 output blocks accumulate in place; scratch only for narrow outputs.
    use_scratch = np.dtype(out_dtype) != np.dtype(np.float32)
    scratch_shapes = [pltpu.VMEM((tm, tn), jnp.float32)] if use_scratch else []

    in_b = np.dtype(mxu_dtype).itemsize
    out_b = np.dtype(out_dtype).itemsize

    # Scoped-VMEM budget: double-buffered bf16 inputs + output + optional scratch.
    est_vmem = (2 * in_b * (tm * tk + n_wstreams * tn * tk + (tk if has_ns else 0))
                + 2 * 4 * tn
                + 2 * out_b * tm * tn
                + (4 * tm * tn if use_scratch else 0))

    # Generation-aware limit: v5e/v6e have 128 MiB VMEM, v7x only 64 MiB per TC.
    try:
        vmem_cap = int(pltpu.get_tpu_info().vmem_capacity_bytes)
    except Exception:
        vmem_cap = 64 * 2**20            # conservative (v7x per-TensorCore)
    safe_cap = int(vmem_cap * 0.8)       # headroom for Mosaic internal scratch
    vmem_limit = int(min(safe_cap, max(est_vmem * 3 // 2, 16 * 2**20)))

    mix_flops = (Mp // tm) * 3 * Np * Kp if mode == "mix" else 0
    cost = pl.CostEstimate(
        flops=2 * Mp * Np * Kp + mix_flops,
        transcendentals=0,
        bytes_accessed=(in_b * (Mp * Kp + n_wstreams * Np * Kp
                                + (Kp if has_ns else 0))
                        + out_b * Mp * Np + 4 * Np),
    )

    out = pl.pallas_call(
        kernel,
        out_shape=jax.ShapeDtypeStruct((Mp, Np), out_dtype),
        grid_spec=pltpu.PrefetchScalarGridSpec(
            num_scalar_prefetch=0,
            grid=grid,
            in_specs=in_specs,
            out_specs=o_spec,
            scratch_shapes=scratch_shapes,
        ),
        compiler_params=pltpu.CompilerParams(
            dimension_semantics=("parallel", "parallel", "arbitrary"),
            vmem_limit_bytes=vmem_limit),
        cost_estimate=cost,
    )(*inputs)

    if (Mp, Np) != (M, N):
        out = out[:M, :N]
    return out


# ----------------------------- reference -----------------------------------


def mix_linear_ref(x, weight, bias, target, noise, p, training):
    if (not training) or p == 0.0:
        w_mix = weight
    elif p == 1.0:
        w_mix = jnp.zeros_like(weight) if target is None else target
    else:
        t = jnp.zeros_like(weight) if target is None else target
        n = noise.astype(jnp.float32)[None, :]
        w_mix = ((1.0 - n) * t + n * weight - p * t) / (1.0 - p)
    y = x @ w_mix.T
    if bias is not None:
        y = y + bias[None, :]
    return y


if __name__ == "__main__":
    # bf16 MXU feed with f32 accumulation -> relaxed tolerance vs f32 reference.
    def check(out, ref):
        np.testing.assert_allclose(np.asarray(out), np.asarray(ref),
                                   rtol=2e-2, atol=2e-2)

    key = jax.random.PRNGKey(0)
    kw, kb, kx, kt, kn, kw2, kb2, kx2, kt2, kn2, kx3 = jax.random.split(key, 11)

    # Shapes implied by MixLinear: weight (out, in), bias (out,), x (batch, in).
    batch, in_f, out_f, p = 16, 256, 128, 0.3
    w_bound = math.sqrt(1.0 / in_f)
    weight = jax.random.uniform(kw, (out_f, in_f), jnp.float32, -w_bound, w_bound)
    bias = jax.random.uniform(kb, (out_f,), jnp.float32, -w_bound, w_bound)
    target = 0.01 * jax.random.normal(kt, (out_f, in_f), jnp.float32)
    x = jax.random.normal(kx, (batch, in_f), jnp.float32)
    # PyTorch draws Bernoulli(1-p) over noise[0] ([in_features]) and repeats it.
    noise = jax.random.bernoulli(kn, 1.0 - p, (in_f,)).astype(jnp.float32)

    # 1) training, target given ("mix" kernel, fused on-chip mix).
    out = jax.block_until_ready(mix_linear(x, weight, bias, target, noise, p, True))
    check(out, mix_linear_ref(x, weight, bias, target, noise, p, True))

    # 2) training, target=None ("drop" kernel: noise folded into activations).
    out = jax.block_until_ready(mix_linear(x, weight, bias, None, noise, p, True))
    check(out, mix_linear_ref(x, weight, bias, None, noise, p, True))

    # 3) eval (mixout identity -> plain-linear kernel, no noise/target streams).
    out = jax.block_until_ready(mix_linear(x, weight, bias, target, noise, p, False))
    check(out, mix_linear_ref(x, weight, bias, target, noise, p, False))

    # 4) non-(8,128)-aligned shapes exercise the zero-padding path.
    b2, in2, out2 = 5, 200, 96
    weight2 = jax.random.uniform(kw2, (out2, in2), jnp.float32, -0.1, 0.1)
    bias2 = jax.random.uniform(kb2, (out2,), jnp.float32, -0.1, 0.1)
    target2 = 0.01 * jax.random.normal(kt2, (out2, in2), jnp.float32)
    x2 = jax.random.normal(kx2, (b2, in2), jnp.float32)
    noise2 = jax.random.bernoulli(kn2, 1.0 - p, (in2,)).astype(jnp.float32)
    out = jax.block_until_ready(
        mix_linear(x2, weight2, bias2, target2, noise2, p, True))
    check(out, mix_linear_ref(x2, weight2, bias2, target2, noise2, p, True))

    # 5) p == 1 with target (W_mix == target) and bias=None -> plain kernel.
    out = jax.block_until_ready(mix_linear(x, weight, None, target, noise, 1.0, True))
    check(out, mix_linear_ref(x, weight, None, target, noise, 1.0, True))

    # 6) p == 1 with target=None -> short-circuit (bias broadcast, no kernel).
    out = jax.block_until_ready(mix_linear(x, weight, bias, None, noise, 1.0, True))
    check(out, mix_linear_ref(x, weight, bias, None, noise, 1.0, True))

    # 7) many i-tiles (Mp/tm > 2): W_mix pre-materialized, plain kernel path.
    x3 = jax.random.normal(kx3, (48, in_f), jnp.float32)
    out = jax.block_until_ready(
        mix_linear(x3, weight, bias, target, noise, p, True, tm=8))
    check(out, mix_linear_ref(x3, weight, bias, target, noise, p, True))

    print("KERNEL_OK")
</pallas_src>

<mosaic_0001>
module attributes {stable_mosaic.version = 11 : i64} {
  func.func @_mix_kernel(%arg0: i32, %arg1: i32, %arg2: i32, %arg3: memref<16x256xbf16, #tpu.memory_space<vmem>>, %arg4: memref<128x256xbf16, #tpu.memory_space<vmem>>, %arg5: memref<128x256xbf16, #tpu.memory_space<vmem>>, %arg6: memref<1x256xbf16, #tpu.memory_space<vmem>>, %arg7: memref<1x128xf32, #tpu.memory_space<vmem>>, %arg8: memref<16x128xf32, #tpu.memory_space<vmem>>) attributes {dimension_semantics = [#tpu.dimension_semantics<parallel>, #tpu.dimension_semantics<parallel>, #tpu.dimension_semantics<arbitrary>], iteration_bounds = array<i64: 1, 1, 1>, scalar_prefetch = 0 : i64, scratch_operands = 0 : i64, tpu.core_type = #tpu.core_type<tc>, window_params = [{transform_indices = @transform_0, window_bounds = array<i64: 16, 256>}, {transform_indices = @transform_1, window_bounds = array<i64: 128, 256>}, {transform_indices = @transform_2, window_bounds = array<i64: 128, 256>}, {transform_indices = @transform_3, window_bounds = array<i64: 1, 256>}, {transform_indices = @transform_4, window_bounds = array<i64: 1, 128>}, {transform_indices = @transform_5, window_bounds = array<i64: 16, 128>}]} {
    %c0_i32 = arith.constant 0 : i32
    %0 = arith.cmpi eq, %arg2, %c0_i32 : i32
    %1 = arith.extui %0 : i1 to i32
    %c0_i32_0 = arith.constant 0 : i32
    %2 = arith.cmpi ne, %1, %c0_i32_0 : i32
    scf.if %2 {
      %cst_14 = arith.constant 0.000000e+00 : f32
      %18 = vector.broadcast %cst_14 : f32 to vector<16x128xf32>
      %c0_15 = arith.constant 0 : index
      %c0_16 = arith.constant 0 : index
      %19 = vector.load %arg8[%c0_15, %c0_16] : memref<16x128xf32, #tpu.memory_space<vmem>>, vector<16x128xf32>
      tpu.vector_store %arg8[%c0_15, %c0_16], %18 {strides = array<i32>} : memref<16x128xf32, #tpu.memory_space<vmem>>, vector<16x128xf32>,
    } else {
    }
    %c0 = arith.constant 0 : index
    %c0_1 = arith.constant 0 : index
    %3 = vector.load %arg4[%c0, %c0_1] : memref<128x256xbf16, #tpu.memory_space<vmem>>, vector<128x256xbf16>
    %c0_2 = arith.constant 0 : index
    %c0_3 = arith.constant 0 : index
    %4 = vector.load %arg5[%c0_2, %c0_3] : memref<128x256xbf16, #tpu.memory_space<vmem>>, vector<128x256xbf16>
    %c0_4 = arith.constant 0 : index
    %c0_5 = arith.constant 0 : index
    %5 = vector.load %arg6[%c0_4, %c0_5] : memref<1x256xbf16, #tpu.memory_space<vmem>>, vector<1x256xbf16>
    %6 = arith.subf %3, %4 : vector<128x256xbf16>
    %7 = vector.broadcast %5 : vector<1x256xbf16> to vector<128x256xbf16>
    %8 = arith.mulf %7, %6 : vector<128x256xbf16>
    %9 = arith.addf %4, %8 : vector<128x256xbf16>
    %c0_6 = arith.constant 0 : index
    %c0_7 = arith.constant 0 : index
    %10 = vector.load %arg8[%c0_6, %c0_7] : memref<16x128xf32, #tpu.memory_space<vmem>>, vector<16x128xf32>
    %c0_8 = arith.constant 0 : index
    %c0_9 = arith.constant 0 : index
    %11 = vector.load %arg3[%c0_8, %c0_9] : memref<16x256xbf16, #tpu.memory_space<vmem>>, vector<16x256xbf16>
    %cst = arith.constant dense<0.000000e+00> : vector<16x128xf32>
    %12 = tpu.matmul %11, %9, %cst {dimension_numbers = #tpu.dot_dimension_numbers<[1], [1], [0], [0], [0, 0, 1, 0], [], []>} : vector<16x256xbf16>, vector<128x256xbf16>, vector<16x128xf32> -> vector<16x128xf32>
    %13 = arith.addf %10, %12 : vector<16x128xf32>
    %c0_10 = arith.constant 0 : index
    %c0_11 = arith.constant 0 : index
    %14 = vector.load %arg8[%c0_10, %c0_11] : memref<16x128xf32, #tpu.memory_space<vmem>>, vector<16x128xf32>
    tpu.vector_store %arg8[%c0_10, %c0_11], %13 {strides = array<i32>} : memref<16x128xf32, #tpu.memory_space<vmem>>, vector<16x128xf32>,
    %c0_i32_12 = arith.constant 0 : i32
    %15 = arith.cmpi eq, %arg2, %c0_i32_12 : i32
    %16 = arith.extui %15 : i1 to i32
    %c0_i32_13 = arith.constant 0 : i32
    %17 = arith.cmpi ne, %16, %c0_i32_13 : i32
    scf.if %17 {
      %c0_14 = arith.constant 0 : index
      %c0_15 = arith.constant 0 : index
      %18 = vector.load %arg8[%c0_14, %c0_15] : memref<16x128xf32, #tpu.memory_space<vmem>>, vector<16x128xf32>
      %c0_16 = arith.constant 0 : index
      %c0_17 = arith.constant 0 : index
      %19 = vector.load %arg7[%c0_16, %c0_17] : memref<1x128xf32, #tpu.memory_space<vmem>>, vector<1x128xf32>
      %20 = vector.broadcast %19 : vector<1x128xf32> to vector<16x128xf32>
      %21 = arith.addf %18, %20 : vector<16x128xf32>
      %c0_18 = arith.constant 0 : index
      %c0_19 = arith.constant 0 : index
      %22 = vector.load %arg8[%c0_18, %c0_19] : memref<16x128xf32, #tpu.memory_space<vmem>>, vector<16x128xf32>
      tpu.vector_store %arg8[%c0_18, %c0_19], %21 {strides = array<i32>} : memref<16x128xf32, #tpu.memory_space<vmem>>, vector<16x128xf32>,
    } else {
    }
    return
  }
  func.func @transform_0(%arg0: i32, %arg1: i32, %arg2: i32) -> (i32, i32) {
    %c0_i32 = arith.constant 0 : i32
    return %arg0, %arg2 : i32, i32
  }
  func.func @transform_1(%arg0: i32, %arg1: i32, %arg2: i32) -> (i32, i32) {
    %c0_i32 = arith.constant 0 : i32
    return %arg1, %arg2 : i32, i32
  }
  func.func @transform_2(%arg0: i32, %arg1: i32, %arg2: i32) -> (i32, i32) {
    %c0_i32 = arith.constant 0 : i32
    return %arg1, %arg2 : i32, i32
  }
  func.func @transform_3(%arg0: i32, %arg1: i32, %arg2: i32) -> (i32, i32) {
    %c0_i32 = arith.constant 0 : i32
    %c0_i32_0 = arith.constant 0 : i32
    return %c0_i32, %arg2 : i32, i32
  }
  func.func @transform_4(%arg0: i32, %arg1: i32, %arg2: i32) -> (i32, i32) {
    %c0_i32 = arith.constant 0 : i32
    %c0_i32_0 = arith.constant 0 : i32
    return %c0_i32, %arg1 : i32, i32
  }
  func.func @transform_5(%arg0: i32, %arg1: i32, %arg2: i32) -> (i32, i32) {
    %c0_i32 = arith.constant 0 : i32
    return %arg0, %arg1 : i32, i32
  }
}

</mosaic_0001>

<bundles_post_ra>
// kernel: tpu_custom_call.1
= control target key start
LH: loop header
LB: loop body
LE: loop exit
PB: predicated region body
PF: predicated region fallthrough
CT: control target
= control target key end

     0   :  { %10 = vsyncpa [#allocation3], 0  ;;  %s807_s0 = inlined_call_operand.hbm [shape: bf16[16,256], index: 0, kind: input, shape index: {}]   ;;  %s808_s1 = inlined_call_operand.hbm [shape: bf16[128,256], index: 1, kind: input, shape index: {}]   ;;  %s809_s2 = inlined_call_operand.hbm [shape: bf16[128,256], index: 2, kind: input, shape index: {}]   ;;  %s810_s3 = inlined_call_operand.vmem [shape: bf16[1,256], index: 3, kind: input, shape index: {}]   ;;  %s811_s4 = inlined_call_operand.vmem [shape: f32[1,128], index: 4, kind: input, shape index: {}]   ;;  %s812_s5 = inlined_call_operand.hbm [shape: f32[16,128], index: 5, kind: output, shape index: {}]  }
   0x1   :  { %11 = vsyncpa [#allocation6], 0 }
   0x2   :  { %12 = vsyncpa [#allocation4], 0  ;;  %s677_s18 = smov [#allocation5]   ;;  %s678_s20 = smov [#allocation2]  }
   0x3   :  { %s30_s19 = sshll.u32 %s677_s18, 4  ;;  %s18_s21 = sshll.u32 %s678_s20, 4  ;;  %s31_s19 = int_to_ptr.vmem [resolvable:$true] %s30_s19  ;;  %s714_s21 = int_to_ptr.vmem [resolvable:$true] %s18_s21 }
   0x4   :  { %s583_s24 = scalar_lea.hbm %s808_s1, 2048 }
   0x5   :  { %p584_p0 = scmp.ne.s32.totalorder %s808_s1, %s583_s24  ;;  %p587_p1 = scmp.lt.u32.totalorder %s583_s24, %s808_s1 }
   0x7   :  { %p589_p2 = pnand %p587_p1, %p584_p0 }
   0x9   :  { %592 = shalt.err (!%p589_p2)
}
   0xa   :  { %s593_s29 = scalar_lea.vmem %s31_s19, 2048  ;;  %p598_p4 = scmp.lt.s32.totalorder %s31_s19, %s31_s19 }
   0xb   :  { %p594_p3 = scmp.ne.s32.totalorder %s31_s19, %s593_s29  ;;  %p599_p5 = scmp.lt.s32.totalorder %s593_s29, %s593_s29 }
   0xd   :  { %p600_p6 = por %p599_p5, %p598_p4 }
   0xf   :  { %p601_p7 = pnand %p600_p6, %p594_p3 }
  0x11   :  { %604 = shalt.err (!%p601_p7)
}
  0x12   :  { %s679_s30 = smov 128   ;;  %s680_s6 = smov 8  }
  0x13   :  { %36 = dma.hbm_to_vmem [thread:$0]  %s808_s1, 2048, %s31_s19, [#allocation6], %s679_s30, %s679_s30, %s680_s6  }
  0x14   :  { %s605_s11 = scalar_lea.hbm %s807_s0, 256 }
  0x15   :  { %p606_p8 = scmp.ne.s32.totalorder %s807_s0, %s605_s11  ;;  %p609_p9 = scmp.lt.u32.totalorder %s605_s11, %s807_s0 }
  0x17   :  { %p611_p10 = pnand %p609_p9, %p606_p8 }
  0x19   :  { %614 = shalt.err (!%p611_p10)
}
  0x1a   :  { %s615_s16 = scalar_lea.vmem %s714_s21, 256  ;;  %p620_p12 = scmp.lt.s32.totalorder %s714_s21, %s714_s21 }
  0x1b   :  { %p616_p11 = scmp.ne.s32.totalorder %s714_s21, %s615_s16  ;;  %p621_p13 = scmp.lt.s32.totalorder %s615_s16, %s615_s16 }
  0x1d   :  { %p622_p0 = por %p621_p13, %p620_p12 }
  0x1f   :  { %p623_p1 = pnand %p622_p0, %p616_p11 }
  0x21   :  { %626 = shalt.err (!%p623_p1)
}
  0x22   :  { %24 = dma.hbm_to_vmem [thread:$0]  %s807_s0, 256, %s714_s21, [#allocation3], %s679_s30, %s679_s30, %s680_s6  }
  0x23   :  { %s681_s18 = smov [#allocation7]   ;;  %s627_s23 = scalar_lea.hbm %s809_s2, 2048 }
  0x24   :  { %s42_s19 = sshll.u32 %s681_s18, 4  ;;  %p628_p2 = scmp.ne.s32.totalorder %s809_s2, %s627_s23  ;;  %s43_s19 = int_to_ptr.vmem [resolvable:$true] %s42_s19 }
  0x25   :  { %p631_p3 = scmp.lt.u32.totalorder %s627_s23, %s809_s2 }
  0x27   :  { %p633_p4 = pnand %p631_p3, %p628_p2 }
  0x29   :  { %636 = shalt.err (!%p633_p4)
}
  0x2a   :  { %s637_s28 = scalar_lea.vmem %s43_s19, 2048  ;;  %p642_p6 = scmp.lt.s32.totalorder %s43_s19, %s43_s19 }
  0x2b   :  { %p638_p5 = scmp.ne.s32.totalorder %s43_s19, %s637_s28  ;;  %p643_p7 = scmp.lt.s32.totalorder %s637_s28, %s637_s28 }
  0x2d   :  { %p644_p8 = por %p643_p7, %p642_p6 }
  0x2f   :  { %p645_p9 = pnand %p644_p8, %p638_p5 }
  0x31   :  { %648 = shalt.err (!%p645_p9)
}
  0x32   :  { %48 = dma.hbm_to_vmem [thread:$0]  %s809_s2, 2048, %s43_s19, [#allocation6], %s679_s30, %s679_s30, %s680_s6  }
  0x33   :  { %671 = dma.done.wait [#allocation3], 256  }
  0x34   :  { %672 = vsyncadd [#allocation3], 4294967040 }
  0x35   :  { %673 = dma.done.wait [#allocation6], 4096  }
  0x36   :  { %674 = vsyncadd [#allocation6], 4294963200  ;;  %v130_v0 = vlaneseq  ;;  %v682_v1 = vmov 1966171168   ;;  %v69_v6 = vld [vmem:[#allocation5] sm:$0xff]  ;;  %v70_v7 = vld [vmem:[#allocation5 + $0x8] sm:$0xff] }
  0x37   :  { %v128_v2 = vunpack.c.l.s4 %v682_v1  ;;  %v85_v8 = vld [vmem:[#allocation7] sm:$0xff]  ;;  %v86_v9 = vld [vmem:[#allocation7 + $0x8] sm:$0xff]  ;;  %v520_v10 = vld.sshfl [vmem:[%s810_s3] sm:$0x11 pattern:$0x75316420] }
  0x38   :  { %v131_v3 = vshrl.u32 %v130_v0, 7  ;;  %v102_v11 = vsub.bf16 %v69_v6, %v85_v8  ;;  %v71_v12 = vld [vmem:[#allocation5 + $0x10] sm:$0xff]  ;;  %v103_v13 = vsub.bf16 %v70_v7, %v86_v9  ;;  %v126_v14 = vcombine.high %v520_v10, %v520_v10  ;;  %v72_v17 = vld [vmem:[#allocation5 + $0x18] sm:$0xff]  ;;  %v73_v22 = vld [vmem:[#allocation5 + $0x20] sm:$0xff]  ;;  %s683_s8 = smov [#allocation8]  }
  0x39   :  { %v129_v4 = vunpack.c.0.s8 %v128_v2  ;;  %v87_v18 = vld [vmem:[#allocation7 + $0x10] sm:$0xff]  ;;  %v88_v19 = vld [vmem:[#allocation7 + $0x18] sm:$0xff]  ;;  %v74_v23 = vld [vmem:[#allocation5 + $0x28] sm:$0xff]  ;;  %s507_s9 = sshll.u32 %s683_s8, 4  ;;  %s508_s9 = int_to_ptr.vmem [resolvable:$true] %s507_s9 }
  0x3a   :  { %v146_v16 = vsub.s32 0, %v131_v3  ;;  %v104_v20 = vsub.bf16 %v71_v12, %v87_v18  ;;  %v105_v21 = vsub.bf16 %v72_v17, %v88_v19  ;;  %v89_v24 = vld [vmem:[#allocation7 + $0x20] sm:$0xff]  ;;  %v521_v27 = vcombine.low %v102_v11, %v103_v13  ;;  %v90_v28 = vld [vmem:[#allocation7 + $0x28] sm:$0xff]  ;;  %v75_v38 = vld [vmem:[#allocation5 + $0x30] sm:$0xff]  ;;  %s649_s10 = scalar_lea.vmem %s508_s9, 256  ;;  %p654_p11 = scmp.lt.s32.totalorder %s508_s9, %s508_s9 }
  0x3b   :  { %v132_v5 = vsub.s32 %v129_v4, %v131_v3  ;;  %v106_v30 = vsub.bf16 %v73_v22, %v89_v24  ;;  %v107_v31 = vsub.bf16 %v74_v23, %v90_v28  ;;  %v522_v34 = vcombine.high %v102_v11, %v103_v13  ;;  %v76_v42 = vld [vmem:[#allocation5 + $0x38] sm:$0xff]  ;;  %v91_v43 = vld [vmem:[#allocation7 + $0x30] sm:$0xff]  ;;  %v77_v3 = vld [vmem:[#allocation5 + $0x40] sm:$0xff]  ;;  %p650_p10 = scmp.ne.s32.totalorder %s508_s9, %s649_s10  ;;  %p655_p12 = scmp.lt.s32.totalorder %s649_s10, %s649_s10 }
  0x3c   :  { %v523_v29 = vcombine.low %v104_v20, %v105_v21  ;;  %v524_v35 = vcombine.high %v104_v20, %v105_v21  ;;  %v92_v44 = vld [vmem:[#allocation7 + $0x38] sm:$0xff]  ;;  %v108_v49 = vsub.bf16 %v75_v38, %v91_v43  ;;  %v78_v4 = vld [vmem:[#allocation5 + $0x48] sm:$0xff]  ;;  %v95_v21 = vld [vmem:[#allocation7 + $0x50] sm:$0xff] }
  0x3d   :  { %v133_v15 = vrot.slane %v520_v10, %v132_v5  ;;  %v140_v25 = vrot.slane %v126_v14, %v132_v5  ;;  %v525_v36 = vcombine.low %v106_v30, %v107_v31  ;;  %v526_v37 = vcombine.high %v106_v30, %v107_v31  ;;  %v582_v55 = vld [vmem:[#allocation2 + $0x4] ss:$8 sps:$4 sm:$0xff]   ;;  %v93_v5 = vld [vmem:[#allocation7 + $0x40] sm:$0xff]  ;;  %v94_v6 = vld [vmem:[#allocation7 + $0x48] sm:$0xff]  ;;  %p656_p13 = por %p655_p12, %p654_p11 }
  0x3e   :  { %v109_v50 = vsub.bf16 %v76_v42, %v92_v44  ;;  %473 = vmatprep.mubr.bf16.mxu0 %v582_v55  ;;  %v110_v11 = vsub.bf16 %v77_v3, %v93_v5  ;;  %v111_v12 = vsub.bf16 %v78_v4, %v94_v6  ;;  %v80_v20 = vld [vmem:[#allocation5 + $0x58] sm:$0xff]  ;;  %v81_v31 = vld [vmem:[#allocation5 + $0x60] sm:$0xff]  ;;  %v99_v55 = vld [vmem:[#allocation7 + $0x70] sm:$0xff] }
  0x3f   :  { %v142_v26 = vpack.i.b16 %v133_v15, %v133_v15  ;;  %v149_v33 = vpack.i.b16 %v140_v25, %v140_v25  ;;  %v96_v22 = vld [vmem:[#allocation7 + $0x58] sm:$0xff]  ;;  %v97_v38 = vld [vmem:[#allocation7 + $0x60] sm:$0xff]  ;;  %p657_p0 = pnand %p656_p13, %p650_p10 }
  0x40   :  { %v527_v61 = vcombine.low %v108_v49, %v109_v50  ;;  %v528_v62 = vcombine.high %v108_v49, %v109_v50  ;;  %v529_v17 = vcombine.low %v110_v11, %v111_v12  ;;  %v83_v49 = vld [vmem:[#allocation5 + $0x70] sm:$0xff] }
  0x41   :  { %v769_v32 = vrot.slane %v142_v26, %v146_v16  ;;  %v771_v39 = vrot.slane %v149_v33, %v146_v16 }
  0x43   :  { %v235_v40 = vmul.bf16 %v521_v27, %v769_v32  ;;  %v237_v41 = vmul.bf16 %v523_v29, %v769_v32  ;;  %v236_v45 = vmul.bf16 %v522_v34, %v771_v39  ;;  %v238_v46 = vmul.bf16 %v524_v35, %v771_v39 }
  0x44   :  { %v239_v47 = vmul.bf16 %v525_v36, %v769_v32  ;;  %v240_v48 = vmul.bf16 %v526_v37, %v771_v39  ;;  %v241_v7 = vmul.bf16 %v527_v61, %v769_v32  ;;  %v243_v26 = vmul.bf16 %v529_v17, %v769_v32  ;;  %v82_v37 = vld [vmem:[#allocation5 + $0x68] sm:$0xff] }
  0x45   :  { %v537_v51 = vcombine.low %v235_v40, %v236_v45  ;;  %v538_v52 = vcombine.high %v235_v40, %v236_v45  ;;  %v539_v53 = vcombine.low %v237_v41, %v238_v46  ;;  %v540_v54 = vcombine.high %v237_v41, %v238_v46  ;;  %v98_v40 = vld [vmem:[#allocation7 + $0x68] sm:$0xff] }
  0x46   :  { %v541_v60 = vcombine.low %v239_v47, %v240_v48  ;;  %v542_v2 = vcombine.high %v239_v47, %v240_v48  ;;  %v114_v41 = vsub.bf16 %v81_v31, %v97_v38  ;;  %v115_v42 = vsub.bf16 %v82_v37, %v98_v40 }
  0x47   :  { %v331_v56 = vadd.bf16 %v537_v51, %v85_v8  ;;  %v332_v57 = vadd.bf16 %v538_v52, %v86_v9  ;;  %v333_v58 = vadd.bf16 %v539_v53, %v87_v18  ;;  %v334_v59 = vadd.bf16 %v540_v54, %v88_v19  ;;  %v79_v19 = vld [vmem:[#allocation5 + $0x50] sm:$0xff]  ;;  %v84_v54 = vld [vmem:[#allocation5 + $0x78] sm:$0xff] }
  0x48   :  { %v242_v8 = vmul.bf16 %v528_v62, %v771_v39  ;;  %v335_v9 = vadd.bf16 %v541_v60, %v89_v24  ;;  %v336_v10 = vadd.bf16 %v542_v2, %v90_v28  ;;  %v530_v18 = vcombine.high %v110_v11, %v111_v12 }
  0x49   :  { %v556_v63 = vcombine.high %v331_v56, %v332_v57  ;;  %v555_v0 = vcombine.low %v331_v56, %v332_v57  ;;  %v558_v1 = vcombine.high %v333_v58, %v334_v59  ;;  %v557_v13 = vcombine.low %v333_v58, %v334_v59  ;;  %v100_v56 = vld [vmem:[#allocation7 + $0x78] sm:$0xff] }
  0x4a   :  { %v543_v14 = vcombine.low %v241_v7, %v242_v8  ;;  %v544_v15 = vcombine.high %v241_v7, %v242_v8  ;;  %v560_v16 = vcombine.high %v335_v9, %v336_v10  ;;  %v244_v24 = vmul.bf16 %v530_v18, %v771_v39  ;;  %v580_v18 = vld [vmem:[#allocation2] ss:$8 sps:$4 sm:$0xff]  }
  0x4b   :  { %441 = vmatprep.subr.bf16.mxu0 %v556_v63  ;;  %v112_v27 = vsub.bf16 %v79_v19, %v95_v21  ;;  %v113_v28 = vsub.bf16 %v80_v20, %v96_v22  ;;  %v559_v29 = vcombine.low %v335_v9, %v336_v10  ;;  %v533_v48 = vcombine.low %v114_v41, %v115_v42 }
  0x4c   :  { %442 = vmatpush1.bf16.xpose.msra.mxu0 %v555_v0  ;;  %v337_v23 = vadd.bf16 %v543_v14, %v91_v43  ;;  %v338_v25 = vadd.bf16 %v544_v15, %v92_v44  ;;  %v545_v33 = vcombine.low %v243_v26, %v244_v24  ;;  %v546_v34 = vcombine.high %v243_v26, %v244_v24 }
  0x4d   :  { %443 = vmatprep.subr.bf16.mxu0 %v558_v1  ;;  %v531_v35 = vcombine.low %v112_v27, %v113_v28  ;;  %v532_v36 = vcombine.high %v112_v27, %v113_v28  ;;  %v534_v53 = vcombine.high %v114_v41, %v115_v42  ;;  %v116_v57 = vsub.bf16 %v83_v49, %v99_v55 }
  0x4e   :  { %v562_v30 = vcombine.high %v337_v23, %v338_v25  ;;  %v339_v43 = vadd.bf16 %v545_v33, %v93_v5  ;;  %v340_v44 = vadd.bf16 %v546_v34, %v94_v6  ;;  %v561_v47 = vcombine.low %v337_v23, %v338_v25 }
  0x4f   :  { %v245_v45 = vmul.bf16 %v531_v35, %v769_v32  ;;  %v246_v46 = vmul.bf16 %v532_v36, %v771_v39  ;;  %v117_v58 = vsub.bf16 %v84_v54, %v100_v56  ;;  %v247_v61 = vmul.bf16 %v533_v48, %v769_v32 }
  0x50   :  { %v564_v50 = vcombine.high %v339_v43, %v340_v44  ;;  %v248_v62 = vmul.bf16 %v534_v53, %v771_v39  ;;  %v563_v63 = vcombine.low %v339_v43, %v340_v44 }
  0x51   :  { %v547_v51 = vcombine.low %v245_v45, %v246_v46  ;;  %v548_v52 = vcombine.high %v245_v45, %v246_v46  ;;  %v535_v0 = vcombine.low %v116_v57, %v117_v58  ;;  %v536_v4 = vcombine.high %v116_v57, %v117_v58 }
  0x52   :  { %v549_v2 = vcombine.low %v247_v61, %v248_v62  ;;  %v550_v3 = vcombine.high %v247_v61, %v248_v62 }
  0x53   :  { %v341_v59 = vadd.bf16 %v547_v51, %v95_v21  ;;  %v342_v60 = vadd.bf16 %v548_v52, %v96_v22  ;;  %v249_v7 = vmul.bf16 %v535_v0, %v769_v32  ;;  %v250_v8 = vmul.bf16 %v536_v4, %v771_v39  ;;  %v571_v32 = vld [vmem:[%s811_s4] ss:$0 sm:$0xff] }
  0x54   :  { %444 = vmatpush1.bf16.xpose.msra.mxu0 %v557_v13  ;;  %v343_v5 = vadd.bf16 %v549_v2, %v97_v38  ;;  %v344_v6 = vadd.bf16 %v550_v3, %v98_v40 }
  0x55   :  { %445 = vmatprep.subr.bf16.mxu0 %v560_v16  ;;  %v566_v1 = vcombine.high %v341_v59, %v342_v60  ;;  %v565_v9 = vcombine.low %v341_v59, %v342_v60  ;;  %v551_v11 = vcombine.low %v249_v7, %v250_v8  ;;  %v552_v12 = vcombine.high %v249_v7, %v250_v8 }
  0x56   :  { %v568_v10 = vcombine.high %v343_v5, %v344_v6  ;;  %v567_v15 = vcombine.low %v343_v5, %v344_v6 }
  0x57   :  { %v345_v13 = vadd.bf16 %v551_v11, %v99_v55  ;;  %v346_v14 = vadd.bf16 %v552_v12, %v100_v56 }
  0x59   :  { %v570_v16 = vcombine.high %v345_v13, %v346_v14  ;;  %v569_v17 = vcombine.low %v345_v13, %v346_v14 }
  0x5c   :  { %446 = vmatpush1.bf16.xpose.msra.mxu0 %v559_v29 }
  0x5d   :  { %447 = vmatprep.subr.bf16.mxu0 %v562_v30 }
  0x64   :  { %448 = vmatpush1.bf16.xpose.msra.mxu0 %v561_v47 }
  0x65   :  { %449 = vmatprep.subr.bf16.mxu0 %v564_v50 }
  0x6c   :  { %450 = vmatpush1.bf16.xpose.msra.mxu0 %v563_v63 }
  0x6d   :  { %451 = vmatprep.subr.bf16.mxu0 %v566_v1 }
  0x74   :  { %452 = vmatpush1.bf16.xpose.msra.mxu0 %v565_v9 }
  0x75   :  { %453 = vmatprep.subr.bf16.mxu0 %v568_v10 }
  0x7c   :  { %454 = vmatpush1.bf16.xpose.msra.mxu0 %v567_v15 }
  0x7d   :  { %455 = vmatprep.subr.bf16.mxu0 %v570_v16 }
  0x84   :  { %456 = vmatpush1.bf16.xpose.msra.mxu0 %v569_v17 }
  0x8b   :  { %474 = vmatmul.mubr.bf16.vlgmr.msra.gmra.mrb[0].mxu0 %v580_v18 }
 0x15e   :  { %v475_v19 = vpop.f32.mrb[0].mxu0 }
 0x15f   :  { %v477_v39 = vpop.f32.mrb[1].mxu0  ;;  %v498_v22 = vadd.f32 %v571_v32, %v475_v19 }
 0x160   :  { %v478_v20 = vpop.f32.mrb[2].mxu0 }
 0x161   :  { %v480_v21 = vpop.f32.mrb[3].mxu0  ;;  %v499_v23 = vadd.f32 %v571_v32, %v478_v20  ;;  %500 = vst [vmem:[#allocation8] sm:$0xff] %v498_v22 }
 0x163   :  { %501 = vst [vmem:[#allocation8 + $0x8] sm:$0xff] %v499_v23 }
 0x164   :  { %660 = shalt.err (!%p657_p0)
}
 0x165   :  { %s661_s4 = scalar_lea.hbm %s812_s5, 256 }
 0x166   :  { %p662_p1 = scmp.ne.s32.totalorder %s812_s5, %s661_s4  ;;  %p665_p2 = scmp.lt.u32.totalorder %s661_s4, %s812_s5 }
 0x168   :  { %p667_p3 = pnand %p665_p2, %p662_p1 }
 0x16a   :  { %670 = shalt.err (!%p667_p3)
}
 0x16b   :  { %513 = dma.vmem_to_hbm [thread:$0]  %s508_s9, 256, %s812_s5, [#allocation4], %s679_s30, %s679_s30, %s680_s6  }
 0x16c   :  { %675 = dma.done.wait [#allocation4], 256  }
 0x16d   :  { %676 = vsyncadd [#allocation4], 4294967040 }
 0x16e   :  { %517 = vsyncpa [#allocation3], 1 }
 0x16f   :  { %518 = vsyncpa [#allocation6], 1 }
 0x170   :  { %519 = vsyncpa [#allocation4], 1 }

</bundles_post_ra>
